<compile_context>
chip_gen: v7x
topology: tpu7x:2x2x1
jax: 0.10.0
libtpu: 0.0.40
codegen_flags: <defaults>
</compile_context>

<pallas_src>
import functools

import jax
import jax.numpy as jnp
from jax.experimental import pallas as pl
from jax.experimental.pallas import tpu as pltpu


# ---------------------------------------------------------------------------
# Kernels
# ---------------------------------------------------------------------------

def _layer_norm_kernel(x_ref, gamma_ref, beta_ref, o_ref, *, eps):
    """General path: one logical row per tile row, reduce over the last axis."""
    x = x_ref[...].astype(jnp.float32)                           # (tile_rows, D)
    mean = jnp.mean(x, axis=-1, keepdims=True)                   # (tile_rows, 1)
    centered = x - mean
    var = jnp.mean(centered * centered, axis=-1, keepdims=True)  # unbiased=False
    inv_std = jax.lax.rsqrt(var + eps)
    gamma = gamma_ref[...].astype(jnp.float32)                   # (1, D), resident
    beta = beta_ref[...].astype(jnp.float32)                     # (1, D), resident
    o_ref[...] = (centered * (inv_std * gamma) + beta).astype(o_ref.dtype)


def _layer_norm_packed_kernel(x_ref, gamma_ref, beta_ref, seg_ref, o_ref, *,
                              eps, d_model):
    """Lane-packed path for d_model < 128.

    Each tile row holds k = 128 // d_model logical rows side by side in the
    128 lanes.  Per-logical-row mean / variance are segment reductions done as
    a matmul with a resident (128, 128) block-diagonal ones matrix, which also
    broadcasts the result back to every lane of its segment.
    """
    x = x_ref[...].astype(jnp.float32)                           # (tile_rows, 128)
    seg = seg_ref[...]                                           # (128, 128) f32, resident
    inv_d = 1.0 / float(d_model)
    mean = jnp.dot(x, seg, preferred_element_type=jnp.float32) * inv_d
    centered = x - mean
    var = jnp.dot(centered * centered, seg,
                  preferred_element_type=jnp.float32) * inv_d
    inv_std = jax.lax.rsqrt(var + eps)
    gamma = gamma_ref[...].astype(jnp.float32)                   # (1, 128), resident
    beta = beta_ref[...].astype(jnp.float32)                     # (1, 128), resident
    o_ref[...] = (centered * (inv_std * gamma) + beta).astype(o_ref.dtype)


# ---------------------------------------------------------------------------
# Tiling / VMEM budgeting
# ---------------------------------------------------------------------------

def _vmem_budgets():
    """Return (vmem_limit_bytes, tile_budget_bytes), branched on chip VMEM."""
    cap = None
    try:
        info = pltpu.get_tpu_info()
        cap = getattr(info, "vmem_capacity_bytes", None)
    except Exception:
        cap = None
    if cap is not None and cap >= 100 * 1024 * 1024:
        # v5e / v6e: 128 MiB physical VMEM -> plenty of headroom.
        return 96 * 1024 * 1024, 56 * 1024 * 1024
    # v7x (64 MiB physical) or unknown: stay conservative.
    return 32 * 1024 * 1024, 20 * 1024 * 1024


def _pick_tile_rows(rows, width, itemsize, tile_budget_bytes):
    """Largest row tile that fits the VMEM tile budget (bytes, not a row cap)."""
    # Per-row VMEM footprint estimate:
    #   double-buffered input + output  -> 2 * 2 * width * itemsize
    #   ~2 live f32 full-tile temporaries (x, centered)
    # TODO(synk): for extremely large d_model even 8 rows may exceed the
    # budget; a d_model-split tiling would be needed there.
    bytes_per_row = width * (4 * itemsize + 2 * 4)
    max_rows = max(8, int(tile_budget_bytes // bytes_per_row))
    if rows > max_rows:
        return max(8, (max_rows // 8) * 8)
    # Whole array fits in one tile.  Still split into >= 2 grid steps (when
    # there are at least two full sublane tiles of rows) so the "parallel"
    # row grid can be sharded across both v7x TensorCores.
    if rows >= 16:
        half = -(-rows // 2)
        return ((half + 7) // 8) * 8
    return rows


# ---------------------------------------------------------------------------
# Wrapper
# ---------------------------------------------------------------------------

@functools.partial(jax.jit, static_argnames=("eps",))
def layer_norm(x, gamma, beta, eps=1e-12):
    orig_shape = x.shape
    d_model = orig_shape[-1]
    rows = 1
    for s in orig_shape[:-1]:
        rows *= s

    vmem_limit, tile_budget = _vmem_budgets()
    x2d = x.reshape(rows, d_model)

    # Lane packing for small d_model: pack k logical rows per 128-lane row.
    k = 128 // d_model if d_model < 128 else 1
    pack = (d_model < 128) and (128 % d_model == 0) and (rows % k == 0) and rows > 0

    if pack:
        packed_rows = rows // k
        xk = x2d.reshape(packed_rows, 128)                      # free contiguous reshape
        gamma_l = jnp.tile(gamma.reshape(-1), k).reshape(1, 128)
        beta_l = jnp.tile(beta.reshape(-1), k).reshape(1, 128)
        lane = jnp.arange(128, dtype=jnp.int32)
        seg = (lane[:, None] // d_model == lane[None, :] // d_model).astype(jnp.float32)

        tile_rows = _pick_tile_rows(packed_rows, 128, x.dtype.itemsize, tile_budget)
        grid = (-(-packed_rows // tile_rows),)
        kernel = functools.partial(_layer_norm_packed_kernel, eps=eps, d_model=d_model)

        out = pl.pallas_call(
            kernel,
            out_shape=jax.ShapeDtypeStruct((packed_rows, 128), x.dtype),
            grid_spec=pltpu.PrefetchScalarGridSpec(
                num_scalar_prefetch=0,
                grid=grid,
                in_specs=[
                    pl.BlockSpec((tile_rows, 128), lambda i: (i, 0)),
                    # gamma / beta / segment matrix: whole-array, VMEM-resident,
                    # no per-step DMA or double buffering.
                    pl.BlockSpec(memory_space=pltpu.MemorySpace.VMEM),
                    pl.BlockSpec(memory_space=pltpu.MemorySpace.VMEM),
                    pl.BlockSpec(memory_space=pltpu.MemorySpace.VMEM),
                ],
                out_specs=pl.BlockSpec((tile_rows, 128), lambda i: (i, 0)),
            ),
            compiler_params=pltpu.CompilerParams(
                dimension_semantics=("parallel",),
                vmem_limit_bytes=vmem_limit,
            ),
        )(xk, gamma_l, beta_l, seg)
        return out.reshape(orig_shape)

    # General (unpacked) path.
    gamma2d = gamma.reshape(1, d_model)
    beta2d = beta.reshape(1, d_model)
    tile_rows = _pick_tile_rows(rows, d_model, x.dtype.itemsize, tile_budget)
    grid = (-(-rows // tile_rows),)                              # ragged last block OK
    kernel = functools.partial(_layer_norm_kernel, eps=eps)

    out = pl.pallas_call(
        kernel,
        out_shape=jax.ShapeDtypeStruct((rows, d_model), x.dtype),
        grid_spec=pltpu.PrefetchScalarGridSpec(
            num_scalar_prefetch=0,
            grid=grid,
            in_specs=[
                pl.BlockSpec((tile_rows, d_model), lambda i: (i, 0)),
                pl.BlockSpec(memory_space=pltpu.MemorySpace.VMEM),
                pl.BlockSpec(memory_space=pltpu.MemorySpace.VMEM),
            ],
            out_specs=pl.BlockSpec((tile_rows, d_model), lambda i: (i, 0)),
        ),
        compiler_params=pltpu.CompilerParams(
            dimension_semantics=("parallel",),
            vmem_limit_bytes=vmem_limit,
        ),
    )(x2d, gamma2d, beta2d)
    return out.reshape(orig_shape)


if __name__ == "__main__":
    batch, seq, d_model = 2, 8, 32
    eps = 1e-12  # matches the PyTorch module's default

    def ref_ln(x, g, b, e):
        mean = jnp.mean(x, axis=-1, keepdims=True)
        var = jnp.mean((x - mean) ** 2, axis=-1, keepdims=True)
        return g * ((x - mean) / jnp.sqrt(var + e)) + b

    key = jax.random.PRNGKey(0)
    x = jax.random.normal(key, (batch, seq, d_model), dtype=jnp.float32)
    # nn.Parameter(torch.ones(d_model)) / nn.Parameter(torch.zeros(d_model))
    gamma = jnp.ones((d_model,), dtype=jnp.float32)
    beta = jnp.zeros((d_model,), dtype=jnp.float32)

    out = jax.block_until_ready(layer_norm(x, gamma, beta, eps=eps))
    assert jnp.allclose(out, ref_ln(x, gamma, beta, eps), atol=1e-5, rtol=1e-5), \
        "mismatch vs reference (lane-packed path)"

    # rows % k != 0 -> general path with a ragged last grid block (masked writes).
    x2 = jax.random.normal(jax.random.PRNGKey(1), (3, 137, d_model), dtype=jnp.float32)
    out2 = jax.block_until_ready(layer_norm(x2, gamma, beta, eps=eps))
    assert jnp.allclose(out2, ref_ln(x2, gamma, beta, eps), atol=1e-5, rtol=1e-5), \
        "mismatch vs reference (general ragged path)"

    # Lane-dense d_model (>= 128) path with non-trivial gamma / beta.
    d3 = 256
    g3 = jax.random.normal(jax.random.PRNGKey(2), (d3,), dtype=jnp.float32)
    b3 = jax.random.normal(jax.random.PRNGKey(3), (d3,), dtype=jnp.float32)
    x3 = jax.random.normal(jax.random.PRNGKey(4), (4, 64, d3), dtype=jnp.float32)
    out3 = jax.block_until_ready(layer_norm(x3, g3, b3, eps=1e-12))
    assert jnp.allclose(out3, ref_ln(x3, g3, b3, 1e-12), atol=1e-5, rtol=1e-5), \
        "mismatch vs reference (wide d_model path)"

    print("KERNEL_OK")
</pallas_src>

<mosaic_0001>
module attributes {stable_mosaic.version = 11 : i64} {
  func.func @_layer_norm_packed_kernel(%arg0: i32, %arg1: memref<4x128xf32, #tpu.memory_space<vmem>>, %arg2: memref<1x128xf32, #tpu.memory_space<vmem>>, %arg3: memref<1x128xf32, #tpu.memory_space<vmem>>, %arg4: memref<128x128xf32, #tpu.memory_space<vmem>>, %arg5: memref<4x128xf32, #tpu.memory_space<vmem>>) attributes {dimension_semantics = [#tpu.dimension_semantics<parallel>], iteration_bounds = array<i64: 1>, scalar_prefetch = 0 : i64, scratch_operands = 0 : i64, tpu.core_type = #tpu.core_type<tc>, window_params = [{transform_indices = @transform_0, window_bounds = array<i64: 4, 128>}, {pipeline_mode = #tpu.pipeline_mode<synchronous>, transform_indices = @transform_1, window_bounds = array<i64: 1, 128>}, {pipeline_mode = #tpu.pipeline_mode<synchronous>, transform_indices = @transform_2, window_bounds = array<i64: 1, 128>}, {pipeline_mode = #tpu.pipeline_mode<synchronous>, transform_indices = @transform_3, window_bounds = array<i64: 128, 128>}, {transform_indices = @transform_4, window_bounds = array<i64: 4, 128>}]} {
    %c0 = arith.constant 0 : index
    %c0_0 = arith.constant 0 : index
    %0 = vector.load %arg1[%c0, %c0_0] : memref<4x128xf32, #tpu.memory_space<vmem>>, vector<4x128xf32>
    %c0_1 = arith.constant 0 : index
    %c0_2 = arith.constant 0 : index
    %1 = vector.load %arg4[%c0_1, %c0_2] : memref<128x128xf32, #tpu.memory_space<vmem>>, vector<128x128xf32>
    %cst = arith.constant dense<0.000000e+00> : vector<4x128xf32>
    %2 = tpu.matmul %0, %1, %cst {dimension_numbers = #tpu.dot_dimension_numbers<[1], [0], [0], [1], [0, 0, 1, 1], [], []>} : vector<4x128xf32>, vector<128x128xf32>, vector<4x128xf32> -> vector<4x128xf32>
    %cst_3 = arith.constant 3.125000e-02 : f32
    %3 = vector.broadcast %cst_3 : f32 to vector<4x128xf32>
    %4 = arith.mulf %2, %3 : vector<4x128xf32>
    %5 = arith.subf %0, %4 : vector<4x128xf32>
    %6 = arith.mulf %5, %5 : vector<4x128xf32>
    %cst_4 = arith.constant dense<0.000000e+00> : vector<4x128xf32>
    %7 = tpu.matmul %6, %1, %cst_4 {dimension_numbers = #tpu.dot_dimension_numbers<[1], [0], [0], [1], [0, 0, 1, 1], [], []>} : vector<4x128xf32>, vector<128x128xf32>, vector<4x128xf32> -> vector<4x128xf32>
    %cst_5 = arith.constant 3.125000e-02 : f32
    %8 = vector.broadcast %cst_5 : f32 to vector<4x128xf32>
    %9 = arith.mulf %7, %8 : vector<4x128xf32>
    %cst_6 = arith.constant 9.99999996E-13 : f32
    %10 = vector.broadcast %cst_6 : f32 to vector<4x128xf32>
    %11 = arith.addf %9, %10 : vector<4x128xf32>
    %12 = math.rsqrt %11 : vector<4x128xf32>
    %c0_7 = arith.constant 0 : index
    %c0_8 = arith.constant 0 : index
    %13 = vector.load %arg2[%c0_7, %c0_8] : memref<1x128xf32, #tpu.memory_space<vmem>>, vector<1x128xf32>
    %c0_9 = arith.constant 0 : index
    %c0_10 = arith.constant 0 : index
    %14 = vector.load %arg3[%c0_9, %c0_10] : memref<1x128xf32, #tpu.memory_space<vmem>>, vector<1x128xf32>
    %15 = vector.broadcast %13 : vector<1x128xf32> to vector<4x128xf32>
    %16 = arith.mulf %12, %15 : vector<4x128xf32>
    %17 = arith.mulf %5, %16 : vector<4x128xf32>
    %18 = vector.broadcast %14 : vector<1x128xf32> to vector<4x128xf32>
    %19 = arith.addf %17, %18 : vector<4x128xf32>
    %c0_11 = arith.constant 0 : index
    %c0_12 = arith.constant 0 : index
    %20 = vector.load %arg5[%c0_11, %c0_12] : memref<4x128xf32, #tpu.memory_space<vmem>>, vector<4x128xf32>
    tpu.vector_store %arg5[%c0_11, %c0_12], %19 {strides = array<i32>} : memref<4x128xf32, #tpu.memory_space<vmem>>, vector<4x128xf32>,
    return
  }
  func.func @transform_0(%arg0: i32) -> (i32, i32) {
    %c0_i32 = arith.constant 0 : i32
    %c0_i32_0 = arith.constant 0 : i32
    return %arg0, %c0_i32 : i32, i32
  }
  func.func @transform_1(%arg0: i32) -> (i32, i32) {
    %c0_i32 = arith.constant 0 : i32
    %c0_i32_0 = arith.constant 0 : i32
    %c0_i32_1 = arith.constant 0 : i32
    return %c0_i32, %c0_i32_0 : i32, i32
  }
  func.func @transform_2(%arg0: i32) -> (i32, i32) {
    %c0_i32 = arith.constant 0 : i32
    %c0_i32_0 = arith.constant 0 : i32
    %c0_i32_1 = arith.constant 0 : i32
    return %c0_i32, %c0_i32_0 : i32, i32
  }
  func.func @transform_3(%arg0: i32) -> (i32, i32) {
    %c0_i32 = arith.constant 0 : i32
    %c0_i32_0 = arith.constant 0 : i32
    %c0_i32_1 = arith.constant 0 : i32
    return %c0_i32, %c0_i32_0 : i32, i32
  }
  func.func @transform_4(%arg0: i32) -> (i32, i32) {
    %c0_i32 = arith.constant 0 : i32
    %c0_i32_0 = arith.constant 0 : i32
    return %arg0, %c0_i32 : i32, i32
  }
}

</mosaic_0001>

<bundles_post_ra>
// kernel: tile.13
= control target key start
LH: loop header
LB: loop body
LE: loop exit
PB: predicated region body
PF: predicated region fallthrough
CT: control target
= control target key end

     0   :  { %s22_s0 = inlined_call_operand.vmem [shape: f32[32], index: 0, kind: input, shape index: {}]   ;;  %s23_s1 = inlined_call_operand.vmem [shape: f32[4,32], index: 1, kind: output, shape index: {}]  }
   0x1   :  { %v4_v0 = vld [vmem:[%s22_s0] ss:$0 sm:$0xff] }
   0x2   :  { %5 = vst [vmem:[%s23_s1] sm:$0xf] %v4_v0 }

// kernel: tile.14
= control target key start
LH: loop header
LB: loop body
LE: loop exit
PB: predicated region body
PF: predicated region fallthrough
CT: control target
= control target key end

     0   :  { %vm7_vm0 = vcmask 261120   ;;  %s37_s8 = smov 32   ;;  %s38_s9 = smov 64   ;;  %vm13_vm1 = vcmask 1048320   ;;  %vm19_vm2 = vcmask 785920   ;;  %vm25_vm3 = vcmask 523520   ;;  %s55_s0 = inlined_call_operand.vmem [shape: f32[4,32], index: 0, kind: input, shape index: {}]   ;;  %s56_s1 = inlined_call_operand.vmem [shape: f32[1,128], index: 1, kind: output, shape index: {}]  }
   0x1   :  { %v4_v0 = vld [vmem:[%s55_s0] sm:$0xf]  ;;  %s36_s0 = smov 96  }
   0x2   :  { %5 = vst [vmem:[#allocation1] sm:$0xf] %v4_v0 }
   0x9   :  { %v10_v1 = vld [vmem:[#allocation1 + $0x3] sm:$0x1]   ;;  %v22_v2 = vld [vmem:[#allocation1 + $0x1] sm:$0x1]   ;;  %v6_v3 = vld [vmem:[#allocation1] sm:$0x1]  }
   0xa   :  { %11 = vrot.lane.b32.xlu0 %v10_v1, %s36_s0  ;;  %23 = vrot.lane.b32.xlu1 %v22_v2, %s37_s8  ;;  %v16_v4 = vld [vmem:[#allocation1 + $0x2] sm:$0x1]   ;;  %8 = vst.msk [vmem:[#allocation0] sm:$0x1] %vm7_vm0, %v6_v3  }
   0xe   :  { %17 = vrot.lane.b32.xlu0 %v16_v4, %s38_s9 }
  0x7c   :  { %v12_v5 = vpop.permute.xlu0 %11   ;;  %v24_v6 = vpop.permute.xlu1 %23  }
  0x7d   :  { %14 = vst.msk [vmem:[#allocation0] sm:$0x1] %vm13_vm1, %v12_v5  }
  0x80   :  { %v18_v7 = vpop.permute.xlu0 %17  }
  0x81   :  { %20 = vst.msk [vmem:[#allocation0] sm:$0x1] %vm19_vm2, %v18_v7  }
  0x82   :  { %26 = vst.msk [vmem:[#allocation0] sm:$0x1] %vm25_vm3, %v24_v6  }
  0x89   :  { %v30_v8 = vld [vmem:[#allocation0] sm:$0x1] }
  0x8a   :  { %32 = vst [vmem:[%s56_s1] sm:$0x1] %v30_v8 }

// kernel: layer_norm.1
= control target key start
LH: loop header
LB: loop body
LE: loop exit
PB: predicated region body
PF: predicated region fallthrough
CT: control target
= control target key end

     0   :  { %v361_v0 = vmov 0.0|0.0   ;;  %vm362_vm0 = vmmov 0   ;;  %v363_v4 = vmov 0.0   ;;  %s449_s3 = inlined_call_operand.vmem [shape: f32[128,128], index: 3, kind: input, shape index: {}]   ;;  %s450_s0 = inlined_call_operand.vmem [shape: f32[4,128], index: 0, kind: input, shape index: {}]   ;;  %s451_s1 = inlined_call_operand.vmem [shape: f32[1,128], index: 1, kind: input, shape index: {}]   ;;  %s452_s2 = inlined_call_operand.vmem [shape: f32[1,128], index: 2, kind: input, shape index: {}]   ;;  %s453_s4 = inlined_call_operand.vmem [shape: f32[4,128], index: 4, kind: output, shape index: {}]  }
   0x1   :  { %308 = vmatprep.subr.bf16.mxu0 %v361_v0  ;;  %v18_v1 = vld [vmem:[%s449_s3] sm:$0xff]  ;;  %v19_v2 = vld [vmem:[%s449_s3 + $0x8] sm:$0xff]  ;;  %v20_v3 = vld [vmem:[%s449_s3 + $0x10] sm:$0xff]  ;;  %270 = vmatprep.mubr.msk.f32.mxu0 %vm362_vm0, %v363_v4 }
   0x2   :  { %v309_v5 = vpack.c.bf16 %v19_v2, %v18_v1  ;;  %v21_v6 = vld [vmem:[%s449_s3 + $0x18] sm:$0xff]  ;;  %332 = vmatprep.subr.bf16.mxu1 %v361_v0  ;;  %305 = vmatprep.mubr.msk.f32.mxu1 %vm362_vm0, %v363_v4  ;;  %v22_v8 = vld [vmem:[%s449_s3 + $0x20] sm:$0xff]  ;;  %v23_v9 = vld [vmem:[%s449_s3 + $0x28] sm:$0xff] }
   0x3   :  { %v312_v7 = vpack.c.bf16 %v21_v6, %v20_v3  ;;  %v315_v10 = vpack.c.bf16 %v23_v9, %v22_v8  ;;  %v24_v11 = vld [vmem:[%s449_s3 + $0x30] sm:$0xff]  ;;  %v25_v12 = vld [vmem:[%s449_s3 + $0x38] sm:$0xff]  ;;  %v26_v14 = vld [vmem:[%s449_s3 + $0x40] sm:$0xff] }
   0x4   :  { %310 = vmatpush3.bf16.msra.mxu0 %v309_v5  ;;  %334 = vmatpush3.bf16.msra.mxu1 %v309_v5  ;;  %v318_v13 = vpack.c.bf16 %v25_v12, %v24_v11  ;;  %v27_v15 = vld [vmem:[%s449_s3 + $0x48] sm:$0xff]  ;;  %v28_v17 = vld [vmem:[%s449_s3 + $0x50] sm:$0xff]  ;;  %v29_v18 = vld [vmem:[%s449_s3 + $0x58] sm:$0xff] }
   0x5   :  { %311 = vmatprep.subr.bf16.mxu0 %v361_v0  ;;  %335 = vmatprep.subr.bf16.mxu1 %v361_v0  ;;  %v321_v16 = vpack.c.bf16 %v27_v15, %v26_v14  ;;  %v324_v19 = vpack.c.bf16 %v29_v18, %v28_v17  ;;  %v30_v20 = vld [vmem:[%s449_s3 + $0x60] sm:$0xff]  ;;  %v31_v21 = vld [vmem:[%s449_s3 + $0x68] sm:$0xff]  ;;  %v32_v23 = vld [vmem:[%s449_s3 + $0x70] sm:$0xff] }
   0x6   :  { %v327_v22 = vpack.c.bf16 %v31_v21, %v30_v20  ;;  %v33_v24 = vld [vmem:[%s449_s3 + $0x78] sm:$0xff]  ;;  %v17_v26 = vld [vmem:[%s450_s0] sm:$0xf] }
   0x7   :  { %v330_v25 = vpack.c.bf16 %v33_v24, %v32_v23  ;;  %v202_v36 = vld [vmem:[%s451_s1] ss:$0 sm:$0xff] }
   0x8   :  { %313 = vmatpush3.bf16.msra.mxu0 %v312_v7  ;;  %337 = vmatpush3.bf16.msra.mxu1 %v312_v7  ;;  %v203_v39 = vld [vmem:[%s452_s2] ss:$0 sm:$0xff] }
   0x9   :  { %314 = vmatprep.subr.bf16.mxu0 %v361_v0  ;;  %338 = vmatprep.subr.bf16.mxu1 %v361_v0 }
   0xc   :  { %316 = vmatpush3.bf16.msra.mxu0 %v315_v10  ;;  %340 = vmatpush3.bf16.msra.mxu1 %v315_v10 }
   0xd   :  { %317 = vmatprep.subr.bf16.mxu0 %v361_v0  ;;  %341 = vmatprep.subr.bf16.mxu1 %v361_v0 }
  0x10   :  { %319 = vmatpush3.bf16.msra.mxu0 %v318_v13  ;;  %343 = vmatpush3.bf16.msra.mxu1 %v318_v13 }
  0x11   :  { %320 = vmatprep.subr.bf16.mxu0 %v361_v0  ;;  %344 = vmatprep.subr.bf16.mxu1 %v361_v0 }
  0x14   :  { %322 = vmatpush3.bf16.msra.mxu0 %v321_v16  ;;  %346 = vmatpush3.bf16.msra.mxu1 %v321_v16 }
  0x15   :  { %323 = vmatprep.subr.bf16.mxu0 %v361_v0  ;;  %347 = vmatprep.subr.bf16.mxu1 %v361_v0 }
  0x18   :  { %325 = vmatpush3.bf16.msra.mxu0 %v324_v19  ;;  %349 = vmatpush3.bf16.msra.mxu1 %v324_v19 }
  0x19   :  { %326 = vmatprep.subr.bf16.mxu0 %v361_v0  ;;  %350 = vmatprep.subr.bf16.mxu1 %v361_v0 }
  0x1c   :  { %328 = vmatpush3.bf16.msra.mxu0 %v327_v22  ;;  %352 = vmatpush3.bf16.msra.mxu1 %v327_v22 }
  0x1d   :  { %329 = vmatprep.subr.bf16.mxu0 %v361_v0  ;;  %353 = vmatprep.subr.bf16.mxu1 %v361_v0 }
  0x20   :  { %331 = vmatpush3.bf16.msra.mxu0 %v330_v25  ;;  %355 = vmatpush3.bf16.msra.mxu1 %v330_v25 }
  0x23   :  { %271 = vmatmul.mubr.f32.vlgmr.msra.gmra.mrb[0].mxu0 %v17_v26 }
  0xf6   :  { %v100_v27 = vpop.f32.mrb[0].mxu0 }
  0xf7   :  { %v104_v28 = vmul.f32 0.03125, %v100_v27  ;;  %v272_v29 = vpop.f32.mrb[1].mxu0 }
  0xf9   :  { %v105_v30 = vsub.f32 %v17_v26, %v104_v28 }
  0xfb   :  { %v106_v31 = vmul.f32 %v105_v30, %v105_v30 }
  0xfd   :  { %306 = vmatmul.mubr.f32.vlgmr.msra.gmra.mrb[0].mxu1 %v106_v31 }
 0x1d0   :  { %v173_v32 = vpop.f32.mrb[0].mxu1 }
 0x1d1   :  { %v177_v33 = vmul.f32 0.03125, %v173_v32  ;;  %v307_v34 = vpop.f32.mrb[1].mxu1 }
 0x1d3   :  { %v178_v35 = vadd.f32 1e-12, %v177_v33 }
 0x1d5   :  { %359 = vrsqrt.f32 %v178_v35 }
 0x1df   :  { %v360_v37 = vpop.eup %359 }
 0x1e0   :  { %v188_v38 = vmul.f32 %v360_v37, %v202_v36 }
 0x1e2   :  { %v189_v40 = vmul.f32 %v188_v38, %v105_v30 }
 0x1e4   :  { %v196_v41 = vadd.f32 %v203_v39, %v189_v40 }
 0x1e6   :  { %197 = vst [vmem:[%s453_s4] sm:$0xf] %v196_v41 }

</bundles_post_ra>
